<compile_context>
chip_gen: v7x
topology: tpu7x:2x2x1
jax: 0.10.0
libtpu: 0.0.40
codegen_flags: <defaults>
</compile_context>

<pallas_src>
import math

import jax
import jax.numpy as jnp
from jax.experimental import pallas as pl
from jax.experimental.pallas import tpu as pltpu


def _gcn_kernel(x_ref, adj_ref, w_ref, bcat_ref, o_ref, acc_ref):
    # x_ref:    (1, tile_k, B*E_in)   batch-folded column block of this channel's x
    # adj_ref:  (1, tile_n, tile_k)   (row, col) tile of this channel's adjacency
    # w_ref:    (E_in, E_out)         resident (constant index map)
    # bcat_ref: (1, B*E_out)          bias tiled B times along lanes, resident
    # o_ref:    (1, tile_n, B*E_out)  lane-dense output slab
    # acc_ref:  (tile_n, B*E_in) f32  node-mixing accumulator
    k = pl.program_id(2)

    @pl.when(k == 0)
    def _():
        acc_ref[...] = jnp.zeros_like(acc_ref)

    # One MXU call mixes nodes for the whole batch at once.
    acc_ref[...] += jnp.dot(adj_ref[0], x_ref[0],
                            preferred_element_type=jnp.float32)

    @pl.when(k == pl.num_programs(2) - 1)
    def _():
        E_in, E_out = w_ref.shape
        B = acc_ref.shape[-1] // E_in
        w = w_ref[...].astype(jnp.float32)
        mixed = acc_ref[...]                                   # (tile_n, B*E_in)
        # Cheap per-batch W matmuls on the already-mixed result, concatenated
        # into one lane-dense slab so the HBM store is unmasked.
        parts = [
            jnp.dot(mixed[:, b * E_in:(b + 1) * E_in], w,
                    preferred_element_type=jnp.float32)
            for b in range(B)
        ]
        slab = parts[0] if B == 1 else jnp.concatenate(parts, axis=-1)
        o_ref[0] = (slab + bcat_ref[...].astype(jnp.float32)).astype(o_ref.dtype)


def _choose_tiles(N, B, E_in, E_out, itemsize):
    """Pick (tile_n, tile_k) honoring the (8, 128) block rule and the actual
    per-generation VMEM budget (64 MiB on v7x, 128 MiB on v5e/v6e)."""
    try:
        vmem_cap = int(pltpu.get_tpu_info().vmem_capacity_bytes)
    except Exception:  # interpret mode / API drift: assume the smallest (v7x)
        vmem_cap = 64 * 1024 * 1024
    budget = int(vmem_cap * 0.6)  # ~40% headroom for compiler scratch / pipelining

    # Row tiles: multiple of 8 (sublane) or full N. Column (contraction) tiles
    # are the adjacency block's lane dim: multiple of 128 or full N.
    tn_cands = sorted({t for t in (2048, 1024, 512, 384, 256, 128, 64, 32, 16, 8)
                       if N % t == 0} | {N}, reverse=True)
    tk_cands = sorted({t for t in (2048, 1024, 512, 256, 128)
                       if N % t == 0} | {N}, reverse=True)

    def resident_bytes(tn, tk):
        x_blk = 2 * tk * B * E_in * itemsize            # double-buffered input
        adj_blk = 2 * tn * tk * itemsize
        out_blk = 2 * tn * B * E_out * itemsize
        acc = tn * B * E_in * 4                         # f32 scratch
        consts = 2 * (E_in * E_out + B * E_out) * itemsize
        return x_blk + adj_blk + out_blk + acc + consts

    for tn in tn_cands:
        for tk in tk_cands:
            if resident_bytes(tn, tk) <= budget:
                return tn, tk, resident_bytes(tn, tk), vmem_cap
    # Nothing fits even at the smallest aligned tiles: take the smallest pair.
    # TODO(synk): pad / mask a ragged last tile instead of this fallback.
    tn, tk = tn_cands[-1], tk_cands[-1]
    return tn, tk, resident_bytes(tn, tk), vmem_cap


def graph_convolution(x, adj, weight, bias=None):
    B, C, N, E_in = x.shape
    E_out = weight.shape[1]
    if bias is None:
        bias = jnp.zeros((1, E_out), dtype=weight.dtype)

    # --- wrapper-side layout plumbing (pure reshapes / transposes) -----------
    # Fold the batch into the lane dim: x_cat[c, n, b*E_in + e] = x[b, c, n, e]
    x_cat = jnp.transpose(x, (1, 2, 0, 3)).reshape(C, N, B * E_in)
    # Matching bias layout for the (tile_n, B*E_out) output slab.
    bias_cat = jnp.tile(bias.reshape(1, E_out), (1, B))

    tile_n, tile_k, resident, vmem_cap = _choose_tiles(
        N, B, E_in, E_out, jnp.dtype(x.dtype).itemsize)
    n_row, n_col = N // tile_n, N // tile_k
    vmem_limit = int(min(vmem_cap, max(2 * resident + (8 << 20), 32 << 20)))

    out_slab = pl.pallas_call(
        _gcn_kernel,
        out_shape=jax.ShapeDtypeStruct((C, N, B * E_out), x.dtype),
        grid_spec=pltpu.PrefetchScalarGridSpec(
            num_scalar_prefetch=0,
            # channel / node-row tiles are independent ("parallel"); the
            # contraction (node-column) axis is last and "arbitrary".
            grid=(C, n_row, n_col),
            in_specs=[
                pl.BlockSpec((1, tile_k, B * E_in), lambda c, t, k: (c, k, 0)),
                pl.BlockSpec((1, tile_n, tile_k), lambda c, t, k: (c, t, k)),
                pl.BlockSpec((E_in, E_out), lambda c, t, k: (0, 0)),
                pl.BlockSpec((1, B * E_out), lambda c, t, k: (0, 0)),
            ],
            out_specs=pl.BlockSpec((1, tile_n, B * E_out),
                                   lambda c, t, k: (c, t, 0)),
            scratch_shapes=[pltpu.VMEM((tile_n, B * E_in), jnp.float32)],
        ),
        compiler_params=pltpu.CompilerParams(
            dimension_semantics=("parallel", "parallel", "arbitrary"),
            vmem_limit_bytes=vmem_limit,
        ),
    )(x_cat, adj, weight, bias_cat)

    # Un-fold the batch: (C, N, B*E_out) -> (B, C, N, E_out)
    return jnp.transpose(out_slab.reshape(C, N, B, E_out), (2, 0, 1, 3))


def init_params(key, in_features, out_features):
    """Deterministic init matching reset_parameters(): W ~ U(-stdv, stdv), bias = 0."""
    stdv = 1.0 / math.sqrt(out_features)
    w = jax.random.uniform(
        key, (in_features, out_features), dtype=jnp.float32,
        minval=-stdv, maxval=stdv)
    b = jnp.zeros((1, out_features), dtype=jnp.float32)
    return w, b


if __name__ == "__main__":
    # Small shapes consistent with the module's forward.
    B, C, N = 2, 4, 16
    E_in, E_out = 8, 32

    key = jax.random.PRNGKey(0)
    k_x, k_adj, k_w, k_b = jax.random.split(key, 4)

    x = jax.random.normal(k_x, (B, C, N, E_in), dtype=jnp.float32)
    adj = jax.random.uniform(k_adj, (C, N, N), dtype=jnp.float32)
    weight, bias = init_params(k_w, E_in, E_out)
    # use a nonzero bias so the bias-add path is actually exercised
    bias = bias + 0.1 * jax.random.normal(k_b, bias.shape, dtype=jnp.float32)

    out = graph_convolution(x, adj, weight, bias)
    out = jax.block_until_ready(out)

    # Reference check in plain JAX (same semantics as the PyTorch forward).
    support_ref = jnp.matmul(x, weight)                      # (B, C, N, E_out)
    out_ref = jnp.matmul(adj, support_ref) + bias            # adj broadcast over B
    assert out.shape == (B, C, N, E_out)
    # (adj@x)@W vs adj@(x@W) differ only by fp reassociation -> modest tolerance
    assert jnp.allclose(out, out_ref, atol=1e-4, rtol=1e-4), (
        float(jnp.max(jnp.abs(out - out_ref))))

    print("KERNEL_OK")
</pallas_src>

<mosaic_0001>
module attributes {stable_mosaic.version = 11 : i64} {
  func.func @_gcn_kernel(%arg0: i32, %arg1: i32, %arg2: i32, %arg3: memref<1x16x16xf32, #tpu.memory_space<vmem>>, %arg4: memref<1x16x16xf32, #tpu.memory_space<vmem>>, %arg5: memref<8x32xf32, #tpu.memory_space<vmem>>, %arg6: memref<1x64xf32, #tpu.memory_space<vmem>>, %arg7: memref<1x16x64xf32, #tpu.memory_space<vmem>>, %arg8: memref<16x16xf32, #tpu.memory_space<vmem>>) attributes {dimension_semantics = [#tpu.dimension_semantics<parallel>, #tpu.dimension_semantics<parallel>, #tpu.dimension_semantics<arbitrary>], iteration_bounds = array<i64: 4, 1, 1>, scalar_prefetch = 0 : i64, scratch_operands = 1 : i64, tpu.core_type = #tpu.core_type<tc>, window_params = [{transform_indices = @transform_0, window_bounds = array<i64: 1, 16, 16>}, {transform_indices = @transform_1, window_bounds = array<i64: 1, 16, 16>}, {pipeline_mode = #tpu.pipeline_mode<synchronous>, transform_indices = @transform_2, window_bounds = array<i64: 8, 32>}, {pipeline_mode = #tpu.pipeline_mode<synchronous>, transform_indices = @transform_3, window_bounds = array<i64: 1, 64>}, {transform_indices = @transform_4, window_bounds = array<i64: 1, 16, 64>}]} {
    %c0_i32 = arith.constant 0 : i32
    %0 = arith.cmpi eq, %arg2, %c0_i32 : i32
    %1 = arith.extui %0 : i1 to i32
    %c0_i32_0 = arith.constant 0 : i32
    %2 = arith.cmpi ne, %1, %c0_i32_0 : i32
    scf.if %2 {
      %cst_12 = arith.constant 0.000000e+00 : f32
      %14 = vector.broadcast %cst_12 : f32 to vector<16x16xf32>
      %c0_13 = arith.constant 0 : index
      %c0_14 = arith.constant 0 : index
      %15 = vector.load %arg8[%c0_13, %c0_14] : memref<16x16xf32, #tpu.memory_space<vmem>>, vector<16x16xf32>
      tpu.vector_store %arg8[%c0_13, %c0_14], %14 {strides = array<i32>} : memref<16x16xf32, #tpu.memory_space<vmem>>, vector<16x16xf32>,
    } else {
    }
    %c0 = arith.constant 0 : index
    %c0_1 = arith.constant 0 : index
    %3 = vector.load %arg8[%c0, %c0_1] : memref<16x16xf32, #tpu.memory_space<vmem>>, vector<16x16xf32>
    %c0_2 = arith.constant 0 : index
    %c0_3 = arith.constant 0 : index
    %c0_4 = arith.constant 0 : index
    %4 = vector.load %arg4[%c0_2, %c0_3, %c0_4] : memref<1x16x16xf32, #tpu.memory_space<vmem>>, vector<1x16x16xf32>
    %5 = vector.shape_cast %4 : vector<1x16x16xf32> to vector<16x16xf32>
    %c0_5 = arith.constant 0 : index
    %c0_6 = arith.constant 0 : index
    %c0_7 = arith.constant 0 : index
    %6 = vector.load %arg3[%c0_5, %c0_6, %c0_7] : memref<1x16x16xf32, #tpu.memory_space<vmem>>, vector<1x16x16xf32>
    %7 = vector.shape_cast %6 : vector<1x16x16xf32> to vector<16x16xf32>
    %cst = arith.constant dense<0.000000e+00> : vector<16x16xf32>
    %8 = tpu.matmul %5, %7, %cst {dimension_numbers = #tpu.dot_dimension_numbers<[1], [0], [0], [1], [0, 0, 1, 1], [], []>} : vector<16x16xf32>, vector<16x16xf32>, vector<16x16xf32> -> vector<16x16xf32>
    %9 = arith.addf %3, %8 : vector<16x16xf32>
    %c0_8 = arith.constant 0 : index
    %c0_9 = arith.constant 0 : index
    %10 = vector.load %arg8[%c0_8, %c0_9] : memref<16x16xf32, #tpu.memory_space<vmem>>, vector<16x16xf32>
    tpu.vector_store %arg8[%c0_8, %c0_9], %9 {strides = array<i32>} : memref<16x16xf32, #tpu.memory_space<vmem>>, vector<16x16xf32>,
    %c0_i32_10 = arith.constant 0 : i32
    %11 = arith.cmpi eq, %arg2, %c0_i32_10 : i32
    %12 = arith.extui %11 : i1 to i32
    %c0_i32_11 = arith.constant 0 : i32
    %13 = arith.cmpi ne, %12, %c0_i32_11 : i32
    scf.if %13 {
      %c0_12 = arith.constant 0 : index
      %c0_13 = arith.constant 0 : index
      %14 = vector.load %arg5[%c0_12, %c0_13] : memref<8x32xf32, #tpu.memory_space<vmem>>, vector<8x32xf32>
      %c0_14 = arith.constant 0 : index
      %c0_15 = arith.constant 0 : index
      %15 = vector.load %arg8[%c0_14, %c0_15] : memref<16x16xf32, #tpu.memory_space<vmem>>, vector<16x16xf32>
      %16 = vector.extract_strided_slice %15 {offsets = [0, 0], sizes = [16, 8], strides = [1, 1]} : vector<16x16xf32> to vector<16x8xf32>
      %cst_16 = arith.constant dense<0.000000e+00> : vector<16x32xf32>
      %17 = tpu.matmul %16, %14, %cst_16 {dimension_numbers = #tpu.dot_dimension_numbers<[1], [0], [0], [1], [0, 0, 1, 1], [], []>} : vector<16x8xf32>, vector<8x32xf32>, vector<16x32xf32> -> vector<16x32xf32>
      %18 = vector.extract_strided_slice %15 {offsets = [0, 8], sizes = [16, 8], strides = [1, 1]} : vector<16x16xf32> to vector<16x8xf32>
      %cst_17 = arith.constant dense<0.000000e+00> : vector<16x32xf32>
      %19 = tpu.matmul %18, %14, %cst_17 {dimension_numbers = #tpu.dot_dimension_numbers<[1], [0], [0], [1], [0, 0, 1, 1], [], []>} : vector<16x8xf32>, vector<8x32xf32>, vector<16x32xf32> -> vector<16x32xf32>
      %20 = tpu.concatenate %17, %19 in 1 : vector<16x32xf32>, vector<16x32xf32> -> vector<16x64xf32>
      %c0_18 = arith.constant 0 : index
      %c0_19 = arith.constant 0 : index
      %21 = vector.load %arg6[%c0_18, %c0_19] : memref<1x64xf32, #tpu.memory_space<vmem>>, vector<1x64xf32>
      %22 = vector.broadcast %21 : vector<1x64xf32> to vector<16x64xf32>
      %23 = arith.addf %20, %22 : vector<16x64xf32>
      %c0_20 = arith.constant 0 : index
      %c0_21 = arith.constant 0 : index
      %c0_22 = arith.constant 0 : index
      %24 = vector.load %arg7[%c0_20, %c0_21, %c0_22] : memref<1x16x64xf32, #tpu.memory_space<vmem>>, vector<1x16x64xf32>
      %25 = vector.shape_cast %24 : vector<1x16x64xf32> to vector<16x64xf32>
      %26 = vector.shape_cast %23 : vector<16x64xf32> to vector<1x16x64xf32>
      tpu.vector_store %arg7[%c0_20, %c0_21, %c0_22], %26 {strides = array<i32>} : memref<1x16x64xf32, #tpu.memory_space<vmem>>, vector<1x16x64xf32>,
    } else {
    }
    return
  }
  func.func @transform_0(%arg0: i32, %arg1: i32, %arg2: i32) -> (i32, i32, i32) {
    %c0_i32 = arith.constant 0 : i32
    %c0_i32_0 = arith.constant 0 : i32
    return %arg0, %arg2, %c0_i32 : i32, i32, i32
  }
  func.func @transform_1(%arg0: i32, %arg1: i32, %arg2: i32) -> (i32, i32, i32) {
    %c0_i32 = arith.constant 0 : i32
    return %arg0, %arg1, %arg2 : i32, i32, i32
  }
  func.func @transform_2(%arg0: i32, %arg1: i32, %arg2: i32) -> (i32, i32) {
    %c0_i32 = arith.constant 0 : i32
    %c0_i32_0 = arith.constant 0 : i32
    %c0_i32_1 = arith.constant 0 : i32
    return %c0_i32, %c0_i32_0 : i32, i32
  }
  func.func @transform_3(%arg0: i32, %arg1: i32, %arg2: i32) -> (i32, i32) {
    %c0_i32 = arith.constant 0 : i32
    %c0_i32_0 = arith.constant 0 : i32
    %c0_i32_1 = arith.constant 0 : i32
    return %c0_i32, %c0_i32_0 : i32, i32
  }
  func.func @transform_4(%arg0: i32, %arg1: i32, %arg2: i32) -> (i32, i32, i32) {
    %c0_i32 = arith.constant 0 : i32
    %c0_i32_0 = arith.constant 0 : i32
    return %arg0, %arg1, %c0_i32 : i32, i32, i32
  }
}

</mosaic_0001>

<bundles_post_ra>
// kernel: tpu_custom_call.1
= control target key start
LH: loop header
LB: loop body
LE: loop exit
PB: predicated region body
PF: predicated region fallthrough
CT: control target
= control target key end

     0   :  { %s1387_s0 = inlined_call_operand.hbm [shape: f32[4,16,16], index: 0, kind: input, shape index: {}]   ;;  %s1388_s1 = inlined_call_operand.hbm [shape: f32[4,16,16], index: 1, kind: input, shape index: {}]   ;;  %s1389_s2 = inlined_call_operand.hbm [shape: f32[8,32], index: 2, kind: input, shape index: {}]   ;;  %s1390_s3 = inlined_call_operand.vmem [shape: f32[1,64], index: 3, kind: input, shape index: {}]   ;;  %s1391_s4 = inlined_call_operand.hbm [shape: f32[4,16,64], index: 4, kind: output, shape index: {}]  }
   0x1   :  { %1399 = sst [smem:[#allocation15_spill]] %s1387_s0 }
   0x2   :  { %1400 = sst [smem:[#allocation16_spill]] %s1389_s2 }
   0x3   :  { %9 = vsyncpa [#allocation4], 0 }
   0x4   :  { %11 = vsyncpa [#allocation4 + $0x1], 0 }
   0x5   :  { %12 = vsyncpa [#allocation7], 0 }
   0x6   :  { %14 = vsyncpa [#allocation7 + $0x1], 0 }
   0x7   :  { %15 = vsyncpa [#allocation5], 0 }
   0x8   :  { %17 = vsyncpa [#allocation5 + $0x1], 0  ;;  %s1101_s15 = smov 0   ;;  %s1103_s16 = smov 0  }
   0x9   :  { %s1105_s17 = smov 0   ;;  %s1107_s18 = smov 0  }
   0xa   :  { %s1109_s19 = smov 0   ;;  %s1111_s20 = smov 0  }
   0xb LB: > { %s1132_s21 = sadd.s32 4294967295, %s1063_s20   ;;  %s739_s22 = sadd.s32 4294967294, %s1063_s20   ;;  %s1063_s20 = sphi %s1111_s20, %s23_s20   ;;  %s1059_s19 = sphi %s1109_s19, %s1426_s19   ;;  %s1055_s18 = sphi %s1107_s18, %s1425_s18   ;;  %s1051_s17 = sphi %s1105_s17, %s1424_s17   ;;  %s1047_s16 = sphi %s1103_s16, %s1423_s16   ;;  %s1043_s15 = sphi %s1101_s15, %s1422_s15  }
   0xc   : > { %s51_s23 = sadd.s32 1, %s1051_s17  ;;  %p58_p0 = scmp.ne.s32.totalorder %s1051_s17, %s1047_s16 }
   0xd   : > { %p59_p1 = scmp.eq.s32.totalorder %s1063_s20, 0  ;;  %p64_p2 = scmp.ne.s32.totalorder %s1047_s16, %s1043_s15 }
   0xe   : > { %p1392_p3 = scmp.eq.s32.totalorder %s1132_s21, 0  ;;  %p162_p4 = scmp.eq.s32.totalorder %s1132_s21, 3 }
   0xf   : > { %p1143_p5 = por %p59_p1, %p58_p0  ;;  %p168_p6 = scmp.eq.s32.totalorder %s739_s22, 3 }
  0x10   : > { %p1149_p7 = por %p1392_p3, %p64_p2  ;;  %p1153_p8 = por %p162_p4, %p58_p0 }
  0x11   : > { %p1157_p9 = por %p168_p6, %p64_p2  ;;  %p740_p10 = scmp.ge.s32.totalorder %s1063_s20, 1 }
  0x12   : > { %s1402_s25 = scalar_select %p1149_p7, 1, 0 }
  0x13   : > { %s1403_s26 = scalar_select %p1153_p8, 1, 0 }
  0x14   : > { %s1404_s27 = scalar_select %p1157_p9, 1, 0 }
  0x15   : > { %p175_p11 = scmp.lt.s32.totalorder %s1063_s20, 5  ;;  %s1065_s29 = smov [#allocation8]  }
  0x16   : > { %s188_s30 = sshll.u32 %s1065_s29, 4  ;;  %p826_p13 = scmp.lt.s32.totalorder %s1063_s20, 4  ;;  %s189_s30 = int_to_ptr.vmem [resolvable:$true] %s188_s30 }
  0x17   : > { %p1163_p12 = pnand %p740_p10, %p175_p11  ;;  %s42_s7 = sadd.s32 1, %s1059_s19 }
  0x18   : > { %p1172_p1 = pnand %p826_p13, %p1143_p5  ;;  %p1183_p4 = scmp.ge.s32.totalorder %s42_s7, 4 }
  0x19   : > { %s1405_s28 = scalar_select %p1163_p12, 1, 0 }
  0x1a   : > { %p810_p0 = pneg %p1163_p12  ;;  %s202_s9 = sand.u32 1, %s1051_s17  }
  0x1b   : > { %s1406_s5 = scalar_select %p1172_p1, 1, 0 }
  0x1c   : > { %p1178_p2 = pnand %p810_p0, %p1392_p3  ;;  %s1409_s2 = sld [smem:[#allocation16_spill]] }
  0x1d   : > { %s1408_s8 = scalar_select %p1183_p4, 1, 0 }
  0x1e   : > { %p887_p6 = pneg %p1178_p2 }
  0x22   : > { %s885_s12 = scalar_lea.hbm %s1409_s2, 128 }
  0x23   : > { %p886_p5 = scmp.ne.s32.totalorder %s1409_s2, %s885_s12  ;;  %p892_p13 = scmp.lt.u32.totalorder %s885_s12, %s1409_s2 }
  0x25   : > { %p888_p10 = pnand %p887_p6, %p886_p5 }
  0x27   : > { %p889_p11 = pneg %p888_p10 }
  0x29   : > { %p894_p0 = pnand %p892_p13, %p889_p11 }
  0x2b   : > { %897 = shalt.err (!%p894_p0)
}
  0x2c   : > { %s898_s29 = scalar_lea.vmem %s189_s30, 128  ;;  %p906_p7 = scmp.lt.s32.totalorder %s189_s30, %s189_s30 }
  0x2d   : > { %p899_p3 = scmp.ne.s32.totalorder %s189_s30, %s898_s29  ;;  %p907_p12 = scmp.lt.s32.totalorder %s898_s29, %s898_s29 }
  0x2f   : > { %p901_p9 = pnand %p899_p3, %p887_p6  ;;  %p908_p1 = por %p907_p12, %p906_p7 }
  0x31   : > { %p902_p8 = pneg %p901_p9 }
  0x33   : > { %p909_p4 = pnand %p908_p1, %p902_p8 }
  0x35   : > { %912 = shalt.err (!%p909_p4)
}
  0x36   : > { %813 = dma.hbm_to_vmem [thread:$0]  (!%p1178_p2), %s1409_s2, 128, %s189_s30, [#allocation7]  }
  0x37   : > { %p1410_p3 = scmp.ne.s32.totalorder %s1408_s8, 0  ;;  %s1208_s12 = sshll.u32 %s202_s9, 4 }
  0x38   : > { %s1397_s13 = sshll.u32 %s1059_s19, 8  ;;  %s1412_s0 = sld [smem:[#allocation15_spill]] }
  0x39   : > { %s1428_s7 = smov (%p1410_p3, %s42_s7), 0  ;;  %s206_s30 = scalar_lea.vmem [#allocation3], %s1208_s12 }
  0x3a   : > { %1411 = sst [smem:[#allocation14_spill]] %s1428_s7  ;;  %s46_s6 = ssub.s32 %s1059_s19, %s1428_s7 }
  0x3b   : > { %p49_p7 = scmp.eq.s32.totalorder %s46_s6, 0  ;;  %s215_s8 = sshll.u32 %s206_s30, 4  ;;  %s1226_s8 = int_to_ptr.vmem [resolvable:$true] %s215_s8 }
  0x3c   : > { %s1228_s10 = scalar_lea.sflag [#allocation4], %s202_s9  ;;  %p1413_p9 = scmp.ne.s32.totalorder %s1406_s5, 0 }
  0x3d   : > { %s1224_s29 = scalar_select %p49_p7, %s1051_s17, %s51_s23  }
  0x3e   : > { %s1218_s24 = scalar_lea.hbm %s1412_s0, %s1397_s13  ;;  %p915_p12 = pneg %p1413_p9 }
  0x3f   : > { %s913_s11 = scalar_lea.hbm %s1218_s24, 256  ;;  %s918_s22 = scalar_lea.hbm %s1412_s0, 1024 }
  0x40   : > { %p914_p8 = scmp.ne.s32.totalorder %s1218_s24, %s913_s11  ;;  %p919_p4 = scmp.lt.u32.totalorder %s1218_s24, %s1412_s0 }
  0x41   : > { %p920_p5 = scmp.lt.u32.totalorder %s918_s22, %s913_s11  ;;  %p922_p10 = scmp.lt.u32.totalorder %s913_s11, %s1218_s24 }
  0x42   : > { %p916_p1 = pnand %p915_p12, %p914_p8 }
  0x43   : > { %p921_p6 = por %p920_p5, %p919_p4 }
  0x44   : > { %p917_p2 = pneg %p916_p1 }
  0x45   : > { %p923_p11 = por %p922_p10, %p921_p6 }
  0x47   : > { %p924_p13 = pnand %p923_p11, %p917_p2 }
  0x49   : > { %927 = shalt.err (!%p924_p13)
}
  0x4a   : > { %s928_s23 = scalar_lea.vmem %s1226_s8, 256  ;;  %s1066_s9 = smov [#allocation3]  }
  0x4b   : > { %p929_p0 = scmp.ne.s32.totalorder %s1226_s8, %s928_s23  ;;  %s933_s6 = sshll.u32 %s1066_s9, 4  ;;  %s934_s6 = int_to_ptr.vmem [resolvable:$false] %s933_s6 }
  0x4c   : > { %s935_s13 = scalar_lea.vmem %s934_s6, 512  ;;  %p936_p8 = scmp.lt.s32.totalorder %s1226_s8, %s934_s6 }
  0x4d   : > { %p931_p3 = pnand %p929_p0, %p915_p12  ;;  %p937_p1 = scmp.lt.s32.totalorder %s935_s13, %s928_s23 }
  0x4f   : > { %p932_p7 = pneg %p931_p3  ;;  %p938_p4 = por %p937_p1, %p936_p8 }
  0x51   : > { %p939_p5 = pnand %p938_p4, %p932_p7 }
  0x53   : > { %942 = shalt.err (!%p939_p5)
}
  0x54   : > { %s1067_s11 = smov 128   ;;  %s1068_s14 = smov 8  }
  0x55   : > { %817 = dma.hbm_to_vmem [thread:$0]  (!%p1413_p9), %s1218_s24, 256, %s1226_s8, %s1228_s10, %s1067_s11, %s1067_s11, %s1068_s14  }
  0x56   : > { %s1414_s22 = sshll.u32 %s1059_s19, 8  ;;  %s229_s6 = scalar_lea.vmem [#allocation6], %s1208_s12 }
  0x57   : > { %s1264_s9 = scalar_lea.hbm %s1388_s1, %s1414_s22  ;;  %s239_s13 = sshll.u32 %s229_s6, 4  ;;  %s1267_s13 = int_to_ptr.vmem [resolvable:$true] %s239_s13 }
  0x58   : > { %s225_s0 = sand.u32 1, %s1063_s20   ;;  %s943_s7 = scalar_lea.hbm %s1264_s9, 256 }
  0x59   : > { %s1270_s2 = scalar_lea.sflag [#allocation7], %s225_s0  ;;  %p944_p2 = scmp.ne.s32.totalorder %s1264_s9, %s943_s7 }
  0x5a   : > { %s948_s10 = scalar_lea.hbm %s1388_s1, 1024  ;;  %p949_p11 = scmp.lt.u32.totalorder %s1264_s9, %s1388_s1 }
  0x5b   : > { %p946_p6 = pnand %p944_p2, %p915_p12  ;;  %p950_p13 = scmp.lt.u32.totalorder %s948_s10, %s943_s7 }
  0x5c   : > { %p952_p3 = scmp.lt.u32.totalorder %s943_s7, %s1264_s9 }
  0x5d   : > { %p947_p10 = pneg %p946_p6  ;;  %p951_p0 = por %p950_p13, %p949_p11 }
  0x5f   : > { %p953_p7 = por %p952_p3, %p951_p0 }
  0x61   : > { %p954_p8 = pnand %p953_p7, %p947_p10 }
  0x63   : > { %957 = shalt.err (!%p954_p8)
}
  0x64   : > { %s958_s0 = scalar_lea.vmem %s1267_s13, 256  ;;  %s1069_s12 = smov [#allocation6]  }
  0x65   : > { %p959_p1 = scmp.ne.s32.totalorder %s1267_s13, %s958_s0  ;;  %s963_s23 = sshll.u32 %s1069_s12, 4  ;;  %s964_s23 = int_to_ptr.vmem [resolvable:$false] %s963_s23 }
  0x66   : > { %s965_s6 = scalar_lea.vmem %s964_s23, 512  ;;  %p966_p2 = scmp.lt.s32.totalorder %s1267_s13, %s964_s23 }
  0x67   : > { %p961_p4 = pnand %p959_p1, %p915_p12  ;;  %p967_p6 = scmp.lt.s32.totalorder %s965_s6, %s958_s0 }
  0x69   : > { %p962_p5 = pneg %p961_p4  ;;  %p968_p11 = por %p967_p6, %p966_p2 }
  0x6b   : > { %p969_p13 = pnand %p968_p11, %p962_p5 }
  0x6d   : > { %972 = shalt.err (!%p969_p13)
}
  0x6e   : > { %820 = dma.hbm_to_vmem [thread:$0]  (!%p1413_p9), %s1264_s9, 256, %s1267_s13, %s1270_s2, %s1067_s11, %s1067_s11, %s1068_s14  }
  0x6f   : > { %p1415_p12 = scmp.ne.s32.totalorder %s1405_s28, 0 }
  0x70   : > { %s1302_s7 = sand.u32 (!%p1415_p12), 1, %s1047_s16   ;;  %p1416_p10 = scmp.ne.s32.totalorder (!%p1415_p12), %s1402_s25, 0 }
  0x71   : > { %251 = sbr.rel (%p1415_p12) target bundleno = 826 (0x33a), region = 36  ;;  %s1305_s24 = sshll.u32 (!%p1415_p12), %s1302_s7, 4 }
  0x72   : > { %s254_s5 = scalar_lea.sflag (!%p1415_p12), [#allocation4], %s1302_s7  ;;  %s257_s8 = scalar_lea.vmem (!%p1415_p12), [#allocation3], %s1305_s24 }
  0x78   : > { %1026 = dma.done.wait (%p1416_p10), %s254_s5, 256  }
  0x79   : > { %1028 = vsyncadd (%p1416_p10), %s254_s5, 4294967040  ;;  %s262_s2 = sand.u32 1, %s1132_s21   ;;  %s266_s11 = scalar_lea.vmem [#allocation6], %s1305_s24 }
  0x7a   : > { %s263_s28 = scalar_lea.sflag [#allocation7], %s262_s2 }
  0x7b   : > { %1030 = dma.done.wait (%p1416_p10), %s263_s28, 256  }
  0x7c   : > { %1032 = vsyncadd (%p1416_p10), %s263_s28, 4294967040  ;;  %p1417_p9 = scmp.eq.s32.totalorder %s1132_s21, 0 }
  0x7e   : > { %1034 = dma.done.wait (%p1417_p9), [#allocation7], 128   ;;  %p1418_p0 = pmov %p1417_p9 }
  0x7f   : > { %vm307_vm0 = vcmask 130048   ;;  %v1070_v0 = vmov 0.0   ;;  %v314_v1 = vld [vmem:[%s257_s8] sm:$0xff]  ;;  %v315_v2 = vld [vmem:[%s257_s8 + $0x8] sm:$0xff]  ;;  %vm408_vm1 = vcmask 64512   ;;  %s1071_s21 = smov 120  }
  0x80   : > { %1036 = vsyncadd (%p1418_p0), [#allocation7], 4294967168  ;;  %309 = vst.msk [vmem:[#allocation2 + $0x8] sm:$0xff] %vm307_vm0, %v1070_v0  ;;  %v312_v3 = vld [vmem:[%s266_s11] sm:$0xff]  ;;  %v796_v4 = vpack.c.bf16 %v315_v2, %v314_v1  ;;  %v313_v5 = vld [vmem:[%s266_s11 + $0x8] sm:$0xff]  ;;  %s1072_s25 = smov 32  }
  0x81   : > { %308 = vst.msk [vmem:[#allocation2] sm:$0xff] %vm307_vm0, %v1070_v0  ;;  %783 = vmatprep.mubr.msk.f32.mxu0 %vm307_vm0, %v312_v3  ;;  %v405_v6 = vld [vmem:[#allocation8] sm:$0xff]  ;;  %vm581_vm2 = vcmask 261120   ;;  %v760_v21 = vld [vmem:[%s1390_s3] ss:$0 sm:$0xff]  ;;  %vm593_vm3 = vcmask 523264  }
  0x82   : > { %797 = vmatprep.subr.bf16.mxu0 %v796_v4  ;;  %786 = vmatprep.subr.mxu1 %v405_v6  ;;  %s768_s13 = sshll.u32 %s1055_s18, 8  ;;  %s299_s10 = scalar_lea.vmem [#allocation9], %s1305_s24 }
  0x83   : > { %799 = vmatpush3.bf16.msra.mxu0 %v796_v4  ;;  %787 = vmatpush3.msra.mxu1 %v405_v6  ;;  %s612_s22 = sshll.u32 %s299_s10, 4  ;;  %s1337_s12 = scalar_lea.hbm %s1391_s4, %s768_s13  ;;  %s1339_s22 = int_to_ptr.vmem [resolvable:$true] %s612_s22 }
  0x84   : > { %791 = vmatprep.subr.mxu1 %v405_v6  ;;  %s597_s23 = scalar_lea.sflag [#allocation5], %s1302_s7  ;;  %s973_s6 = scalar_lea.vmem %s1339_s22, 256 }
  0x85   : > { %p974_p3 = scmp.ne.s32.totalorder %s1339_s22, %s973_s6  ;;  %p1419_p7 = scmp.ne.s32.totalorder %s1403_s26, 0 }
  0x86   : > { %784 = vmatmul.mubr.msk.f32.vlgmr.msra.gmra.mrb[0].mxu0 %vm307_vm0, %v313_v5  ;;  %s1073_s18 = smov [#allocation9]  }
  0x87   : > { %v311_v7 = vld [vmem:[#allocation2 + $0x8] sm:$0xff]  ;;  %p975_p8 = pnand %p974_p3, %p1419_p7  ;;  %s977_s24 = sshll.u32 %s1073_s18, 4  ;;  %s978_s24 = int_to_ptr.vmem [resolvable:$false] %s977_s24 }
  0x88   : > { %v310_v8 = vld [vmem:[#allocation2] sm:$0xff]  ;;  %s979_s5 = scalar_lea.vmem %s978_s24, 512  ;;  %p980_p4 = scmp.lt.s32.totalorder %s1339_s22, %s978_s24 }
  0x89   : > { %p976_p1 = pneg %p975_p8  ;;  %p981_p5 = scmp.lt.s32.totalorder %s979_s5, %s973_s6 }
  0x8b   : > { %p982_p2 = por %p981_p5, %p980_p4 }
  0x8d   : > { %p983_p6 = pnand %p982_p2, %p976_p1 }
 0x159   : > { %v785_v9 = vpop.f32.mrb[0].mxu0 }
 0x15a   : > { %v399_v10 = vadd.f32 %v785_v9, %v311_v7  ;;  %v389_v11 = vpop.f32.mrb[1].mxu0 }
 0x15b   : > { %v398_v12 = vadd.f32 %v389_v11, %v310_v8 }
 0x15c   : > { %401 = vst.msk [vmem:[#allocation2 + $0x8] sm:$0xff] %vm307_vm0, %v399_v10 }
 0x15d   : > { %400 = vst.msk [vmem:[#allocation2] sm:$0xff] %vm307_vm0, %v398_v12 }
 0x163   : > { %v407_v14 = vld [vmem:[#allocation2 + $0x8] sm:$0xff] }
 0x164   : > { %v406_v13 = vld [vmem:[#allocation2] sm:$0xff] }
 0x165   : > { %490 = vrot.lane.b32.xlu0 %v406_v13, %s1071_s21  ;;  %788 = vmatprep.mubr.msk.f32.mxu1 %vm408_vm1, %v406_v13 }
 0x166   : > { %789 = vmatmul.mubr.msk.f32.vlgmr.msra.gmra.mrb[0].mxu1 %vm408_vm1, %v407_v14 }
 0x167   : > { %792 = vmatpush3.msra.mxu1 %v405_v6 }
 0x169   : > { %492 = vrot.lane.b32.xlu0 %v407_v14, %s1071_s21 }
 0x1d7   : > { %v491_v15 = vpop.permute.xlu0 %490 }
 0x1d8   : > { %793 = vmatprep.mubr.msk.f32.mxu1 %vm408_vm1, %v491_v15 }
 0x1db   : > { %v493_v16 = vpop.permute.xlu0 %492 }
 0x1dc   : > { %794 = vmatmul.mubr.msk.f32.vlgmr.msra.gmra.mrb[2].mxu1 %vm408_vm1, %v493_v16 }
 0x239   : > { %v790_v17 = vpop.f32.mrb[0].mxu1 }
 0x23a   : > { %v481_v18 = vpop.f32.mrb[1].mxu1 }
 0x2af   : > { %v795_v19 = vpop.f32.mrb[2].mxu1 }
 0x2b0   : > { %v564_v20 = vpop.f32.mrb[3].mxu1 }
 0x2b1   : > { %575 = vrot.lane.b32.xlu1 %v564_v20, %s1072_s25 }
 0x2b5   : > { %577 = vrot.lane.b32.xlu1 %v795_v19, %s1072_s25 }
 0x323   : > { %v576_v22 = vpop.permute.xlu1 %575 }
 0x324   : > { %v582_v23 = vsel %vm581_vm2, %v481_v18, %v576_v22 }
 0x325   : > { %v591_v24 = vadd.f32 %v760_v21, %v582_v23 }
 0x327   : > { %594 = vst.msk [vmem:[%s299_s10] sm:$0xff] %vm593_vm3, %v591_v24  ;;  %v578_v25 = vpop.permute.xlu1 %577 }
 0x328   : > { %v583_v26 = vsel %vm581_vm2, %v790_v17, %v578_v25 }
 0x329   : > { %v592_v27 = vadd.f32 %v760_v21, %v583_v26 }
 0x32b   : > { %595 = vst.msk [vmem:[%s299_s10 + $0x8] sm:$0xff] %vm593_vm3, %v592_v27 }
 0x32c   : > { %986 = shalt.err (!%p983_p6)
}
 0x32d   : > { %s987_s8 = scalar_lea.hbm %s1337_s12, 256  ;;  %s991_s11 = scalar_lea.hbm %s1391_s4, 1024 }
 0x32e   : > { %p988_p11 = scmp.ne.s32.totalorder %s1337_s12, %s987_s8  ;;  %p992_p10 = scmp.lt.u32.totalorder %s1337_s12, %s1391_s4 }
 0x32f   : > { %p993_p9 = scmp.lt.u32.totalorder %s991_s11, %s987_s8  ;;  %p995_p3 = scmp.lt.u32.totalorder %s987_s8, %s1337_s12 }
 0x330   : > { %p989_p13 = pnand %p988_p11, %p1419_p7 }
 0x331   : > { %p994_p0 = por %p993_p9, %p992_p10 }
 0x332   : > { %p990_p12 = pneg %p989_p13 }
 0x333   : > { %p996_p8 = por %p995_p3, %p994_p0 }
 0x335   : > { %p997_p1 = pnand %p996_p8, %p990_p12 }
 0x337   : > { %1000 = shalt.err (!%p997_p1)
}
 0x338   : > { %s1074_s14 = smov 128   ;;  %s1075_s9 = smov 8  }
 0x339   : > { %808 = dma.vmem_to_hbm [thread:$0]  (%p1419_p7), %s1339_s22, 256, %s1337_s12, %s597_s23, %s1074_s14, %s1074_s14, %s1075_s9  }
 0x33a PF: > { %p828_p4 = scmp.ge.s32.totalorder %s1063_s20, 2  ;;  %s627_s13 = sand.u32 1, %s1043_s15  }
 0x33b   : > { %p1420_p5 = scmp.ne.s32.totalorder %s1404_s27, 0  ;;  %s628_s10 = scalar_lea.sflag [#allocation5], %s627_s13 }
 0x33d   : > { %p822_p2 = pnand %p828_p4, %p1420_p5 }
 0x33f   : > { %1038 = dma.done.wait (!%p822_p2), %s628_s10, 256  }
 0x340   : > { %1040 = vsyncadd (!%p822_p2), %s628_s10, 4294967040  ;;  %s23_s20 = sadd.s32 1, %s1063_s20   ;;  %s1421_s26 = sld [smem:[#allocation14_spill]] }
 0x341   : > { %p20_p6 = scmp.ge.s32.totalorder %s23_s20, 6   ;;  %s1422_s15 = smov %s1047_s16 }
 0x342   : > { %s1423_s16 = smov %s1051_s17  ;;  %s1424_s17 = smov %s1224_s29 }
 0x343   : > { %s1425_s18 = smov %s1059_s19  ;;  %22 = sbr.rel (!%p20_p6) target bundleno = 11 (0xb), region = 106 }
 0x346   : > { %s1426_s19 = smov %s1421_s26 }
 0x34a   :  { %633 = vsyncpa [#allocation4], 1 }
 0x34b   :  { %635 = vsyncpa [#allocation4 + $0x1], 1 }
 0x34c   :  { %636 = vsyncpa [#allocation7], 1 }
 0x34d   :  { %638 = vsyncpa [#allocation7 + $0x1], 1 }
 0x34e   :  { %639 = vsyncpa [#allocation5], 1 }
 0x34f   :  { %641 = vsyncpa [#allocation5 + $0x1], 1 }

</bundles_post_ra>
